<compile_context>
chip_gen: v7x
topology: tpu7x:2x2x1
jax: 0.10.0
libtpu: 0.0.40
codegen_flags: <defaults>
</compile_context>

<pallas_src>
import functools

import numpy as np
import jax
import jax.numpy as jnp
from jax.experimental import pallas as pl
from jax.experimental.pallas import tpu as pltpu


# ----------------------------------------------------------------------------- kernel
def _gae_kernel(states_ref, reff_ref, params_ref, a_t_ref, disc_t_ref, adv_ref):
    """One batch tile of trajectories.

    states_ref : (Bt*(T+1), D) bf16  flattened (trajectory, step) observation rows
    reff_ref   : (Bt, T)       f32   rewards + (gamma-1)*b2   (output bias folded in)
    params_ref : (D+2, H)      bf16  rows [0:D]=W1, row D=b1, row D+1=w2^T
    a_t_ref    : (T+1, T)      f32   (disc @ S)^T  -- TD residual folded into discount
    disc_t_ref : (T, T)        f32   disc^T
    adv_ref    : (Bt, T)       f32   GAE advantages
    """
    bt, t = adv_ref.shape
    m, d = states_ref.shape
    kdim = m // bt                                          # T + 1

    w1 = params_ref[0:d, :]                                 # (D, H) bf16
    b1 = params_ref[d:d + 1, :].astype(jnp.float32)         # (1, H)
    w2 = params_ref[d + 1:d + 2, :].astype(jnp.float32)     # (1, H) == w2^T

    # Value MLP with the batch collapsed into the MXU M dimension:
    # one (Bt*(T+1), D) x (D, H) bf16 matmul, f32 accumulation.
    h = jnp.dot(states_ref[...], w1, preferred_element_type=jnp.float32)   # (M, H)
    h = jnp.maximum(h + b1, 0.0)
    # Bias-free value estimate per (trajectory, step): lane reduction against w2^T.
    v = jnp.sum(h * w2, axis=-1, keepdims=True)             # (M, 1) f32

    # Reward part of the advantages: one f32 matmul for the whole tile.
    adv_r = jnp.dot(reff_ref[...], disc_t_ref[...],
                    preferred_element_type=jnp.float32)     # (Bt, T)

    # Value part: adv_v[b, :] = sum_k v[b*(T+1)+k] * A^T[k, :].
    # Done as Bt rank-1 broadcast-multiply + sublane-reduce updates (flops are
    # negligible vs. layer 1) -- avoids any in-kernel reshape of v.
    a_t = a_t_ref[...]                                      # (T+1, T)
    for b in range(bt):                                     # static unroll, Bt modest
        v_b = v[b * kdim:(b + 1) * kdim, :]                 # (T+1, 1)
        row = jnp.sum(v_b * a_t, axis=0, keepdims=True)     # (1, T)
        adv_ref[b:b + 1, :] = (row + adv_r[b:b + 1, :]).astype(adv_ref.dtype)


# ---------------------------------------------------------------------------- wrapper
def pack_value_params(w1, b1, w2):
    """Pack the value-MLP parameters into one (D+2, H) bf16 array.  ONCE at setup."""
    d, h = w1.shape
    return jnp.concatenate(
        [w1.astype(jnp.bfloat16),
         jnp.reshape(b1, (1, h)).astype(jnp.bfloat16),
         jnp.reshape(w2, (1, h)).astype(jnp.bfloat16)],     # (H,1) column -> (1,H) row
        axis=0)


@functools.partial(jax.jit, static_argnames=("gamma", "lam", "block_b"))
def gae_returns(states, rewards, params, b2, *, gamma, lam, block_b=64):
    """Batched GAE advantages.

    states : (B, T+1, D) float, rewards: (B, T) float -> (B, T) float32 advantages.
    """
    b, kdim, d = states.shape
    t = kdim - 1
    h = params.shape[1]

    # --- compile-time constant discount matrices (numpy -> jit constants).
    #     disc[t,u] = (gamma*lam)^(u-t) for u>=t ;  S = TD-residual stencil.
    #     Safe for lam==0 / gamma==0 (exponents clamped >= 0, 0**0 == 1).
    gl = float(gamma) * float(lam)
    idx = np.arange(t)
    expo = idx[None, :] - idx[:, None]
    disc = np.where(expo >= 0,
                    np.power(gl, np.maximum(expo, 0), dtype=np.float64), 0.0)   # (T, T)
    s_mat = float(gamma) * np.eye(t, kdim, k=1) - np.eye(t, kdim)               # (T, T+1)
    a_t = jnp.asarray((disc @ s_mat).T, dtype=jnp.float32)                      # (T+1, T)
    disc_t = jnp.asarray(disc.T, dtype=jnp.float32)                             # (T, T)

    # Fold the value-net output bias: every delta gets a constant (gamma-1)*b2.
    r_eff = (rewards.astype(jnp.float32)
             + (float(gamma) - 1.0) * jnp.reshape(b2, ()).astype(jnp.float32))

    # --- batch tile size: divides B exactly (no padding copies) and keeps the
    #     sublane (second-minor) block dims 8-aligned unless a single full block.
    bt = b
    for cand in range(min(block_b, b), 0, -1):
        if b % cand == 0 and (cand == b or cand % 8 == 0):
            bt = cand
            break
    grid_len = b // bt
    m = bt * kdim

    # States stream in bf16: halves HBM/VMEM traffic, native-rate bf16 MXU.
    states2d = jnp.reshape(states, (b * kdim, d)).astype(jnp.bfloat16)

    adv = pl.pallas_call(
        _gae_kernel,
        grid=(grid_len,),
        in_specs=[
            pl.BlockSpec((m, d), lambda i: (i, 0)),          # states tile
            pl.BlockSpec((bt, t), lambda i: (i, 0)),         # (bias-folded) rewards tile
            pl.BlockSpec((d + 2, h), lambda i: (0, 0)),      # packed params, VMEM-resident
            pl.BlockSpec((kdim, t), lambda i: (0, 0)),       # A^T, VMEM-resident constant
            pl.BlockSpec((t, t), lambda i: (0, 0)),          # disc^T, VMEM-resident constant
        ],
        out_specs=pl.BlockSpec((bt, t), lambda i: (i, 0)),
        out_shape=jax.ShapeDtypeStruct((b, t), jnp.float32),
        compiler_params=pltpu.CompilerParams(
            dimension_semantics=("parallel",),               # batch tiles -> both TCs on v7x
            vmem_limit_bytes=64 * 1024 * 1024),
    )(states2d, r_eff, params, a_t, disc_t)
    return adv


# -------------------------------------------------------------------------- reference
def gae_returns_ref(states, rewards, w1, b1, w2, b2, *, gamma, lam):
    h = jnp.maximum(
        jnp.einsum('bkd,dh->bkh', states, w1, precision="highest") + b1, 0.0)
    v = jnp.einsum('bkh,h->bk', h, w2[:, 0], precision="highest") + b2[0]   # (B, T+1)
    deltas = gamma * v[:, 1:] + rewards - v[:, :-1]                          # (B, T)
    t = rewards.shape[1]
    idx = jnp.arange(t)
    expo = idx[None, :] - idx[:, None]
    disc = jnp.where(expo >= 0,
                     (gamma * lam) ** jnp.maximum(expo, 0).astype(jnp.float32), 0.0)
    return jnp.einsum('ts,bs->bt', disc, deltas, precision="highest")


# ------------------------------------------------------------------------------ main
if __name__ == "__main__":
    GAMMA = 0.98
    LAM = 0.95
    B = 16         # batch of trajectories
    T = 8          # trajectory length (rewards)
    D = 32         # flat state dim
    H = 64         # hidden_size of the FeedForward value net (n_hidden=1)

    key = jax.random.PRNGKey(0)
    k_s, k_r, k_w1, k_b1, k_w2, k_b2 = jax.random.split(key, 6)

    states = jax.random.normal(k_s, (B, T + 1, D), dtype=jnp.float32)
    rewards = jax.random.normal(k_r, (B, T), dtype=jnp.float32)

    # Deterministic value-network parameters (FeedForward(D, 1, n_hidden=1, hidden=64)).
    w1 = jax.random.normal(k_w1, (D, H), dtype=jnp.float32) * 0.1
    b1 = jax.random.normal(k_b1, (H,), dtype=jnp.float32) * 0.01
    w2 = jax.random.normal(k_w2, (H, 1), dtype=jnp.float32) * 0.1
    b2 = jax.random.normal(k_b2, (1,), dtype=jnp.float32) * 0.01

    params = pack_value_params(w1, b1, w2)   # one-time setup: bf16 cast + pack

    # block_b=8 -> 2 even batch tiles (exercises the parallel grid axis / v7x megacore).
    adv = gae_returns(states, rewards, params, b2, gamma=GAMMA, lam=LAM, block_b=8)
    adv = jax.block_until_ready(adv)

    adv_ref = gae_returns_ref(states, rewards, w1, b1, w2, b2, gamma=GAMMA, lam=LAM)
    assert adv.shape == rewards.shape
    # bf16 states/weights stream -> compare against the f32 reference at bf16-level tolerance.
    assert jnp.allclose(adv, adv_ref, atol=1e-1, rtol=5e-2), \
        float(jnp.max(jnp.abs(adv - adv_ref)))

    print("KERNEL_OK")
</pallas_src>

<mosaic_0001>
module attributes {stable_mosaic.version = 11 : i64} {
  func.func @_gae_kernel(%arg0: i32, %arg1: memref<72x32xbf16, #tpu.memory_space<vmem>>, %arg2: memref<8x8xf32, #tpu.memory_space<vmem>>, %arg3: memref<34x64xbf16, #tpu.memory_space<vmem>>, %arg4: memref<9x8xf32, #tpu.memory_space<vmem>>, %arg5: memref<8x8xf32, #tpu.memory_space<vmem>>, %arg6: memref<8x8xf32, #tpu.memory_space<vmem>>) attributes {dimension_semantics = [#tpu.dimension_semantics<parallel>], iteration_bounds = array<i64: 2>, scalar_prefetch = 0 : i64, scratch_operands = 0 : i64, tpu.core_type = #tpu.core_type<tc>, window_params = [{transform_indices = @transform_0, window_bounds = array<i64: 72, 32>}, {transform_indices = @transform_1, window_bounds = array<i64: 8, 8>}, {pipeline_mode = #tpu.pipeline_mode<synchronous>, transform_indices = @transform_2, window_bounds = array<i64: 34, 64>}, {pipeline_mode = #tpu.pipeline_mode<synchronous>, transform_indices = @transform_3, window_bounds = array<i64: 9, 8>}, {pipeline_mode = #tpu.pipeline_mode<synchronous>, transform_indices = @transform_4, window_bounds = array<i64: 8, 8>}, {transform_indices = @transform_5, window_bounds = array<i64: 8, 8>}]} {
    %c0 = arith.constant 0 : index
    %c0_0 = arith.constant 0 : index
    %0 = vector.load %arg3[%c0, %c0_0] : memref<34x64xbf16, #tpu.memory_space<vmem>>, vector<32x64xbf16>
    %c32 = arith.constant 32 : index
    %c0_1 = arith.constant 0 : index
    %1 = vector.load %arg3[%c32, %c0_1] : memref<34x64xbf16, #tpu.memory_space<vmem>>, vector<1x64xbf16>
    %2 = arith.extf %1 : vector<1x64xbf16> to vector<1x64xf32>
    %c33 = arith.constant 33 : index
    %c0_2 = arith.constant 0 : index
    %3 = vector.load %arg3[%c33, %c0_2] : memref<34x64xbf16, #tpu.memory_space<vmem>>, vector<1x64xbf16>
    %4 = arith.extf %3 : vector<1x64xbf16> to vector<1x64xf32>
    %c0_3 = arith.constant 0 : index
    %c0_4 = arith.constant 0 : index
    %5 = vector.load %arg1[%c0_3, %c0_4] : memref<72x32xbf16, #tpu.memory_space<vmem>>, vector<72x32xbf16>
    %cst = arith.constant dense<0.000000e+00> : vector<72x64xf32>
    %6 = tpu.matmul %5, %0, %cst {dimension_numbers = #tpu.dot_dimension_numbers<[1], [0], [0], [1], [0, 0, 1, 1], [], []>} : vector<72x32xbf16>, vector<32x64xbf16>, vector<72x64xf32> -> vector<72x64xf32>
    %7 = vector.broadcast %2 : vector<1x64xf32> to vector<72x64xf32>
    %8 = arith.addf %6, %7 : vector<72x64xf32>
    %cst_5 = arith.constant 0.000000e+00 : f32
    %9 = vector.broadcast %cst_5 : f32 to vector<72x64xf32>
    %10 = arith.maximumf %8, %9 : vector<72x64xf32>
    %11 = vector.broadcast %4 : vector<1x64xf32> to vector<72x64xf32>
    %12 = arith.mulf %10, %11 : vector<72x64xf32>
    %cst_6 = arith.constant dense<0.000000e+00> : vector<72xf32>
    %13 = vector.multi_reduction <add>, %12, %cst_6 [1] : vector<72x64xf32> to vector<72xf32>
    %14 = vector.shape_cast %13 : vector<72xf32> to vector<72x1xf32>
    %c0_7 = arith.constant 0 : index
    %c0_8 = arith.constant 0 : index
    %15 = vector.load %arg2[%c0_7, %c0_8] : memref<8x8xf32, #tpu.memory_space<vmem>>, vector<8x8xf32>
    %c0_9 = arith.constant 0 : index
    %c0_10 = arith.constant 0 : index
    %16 = vector.load %arg5[%c0_9, %c0_10] : memref<8x8xf32, #tpu.memory_space<vmem>>, vector<8x8xf32>
    %cst_11 = arith.constant dense<0.000000e+00> : vector<8x8xf32>
    %17 = tpu.matmul %15, %16, %cst_11 {dimension_numbers = #tpu.dot_dimension_numbers<[1], [0], [0], [1], [0, 0, 1, 1], [], []>} : vector<8x8xf32>, vector<8x8xf32>, vector<8x8xf32> -> vector<8x8xf32>
    %c0_12 = arith.constant 0 : index
    %c0_13 = arith.constant 0 : index
    %18 = vector.load %arg4[%c0_12, %c0_13] : memref<9x8xf32, #tpu.memory_space<vmem>>, vector<9x8xf32>
    %19 = vector.extract_strided_slice %14 {offsets = [0, 0], sizes = [9, 1], strides = [1, 1]} : vector<72x1xf32> to vector<9x1xf32>
    %20 = vector.broadcast %19 : vector<9x1xf32> to vector<9x8xf32>
    %21 = arith.mulf %20, %18 : vector<9x8xf32>
    %cst_14 = arith.constant dense<0.000000e+00> : vector<8xf32>
    %22 = vector.multi_reduction <add>, %21, %cst_14 [0] : vector<9x8xf32> to vector<8xf32>
    %23 = vector.shape_cast %22 : vector<8xf32> to vector<1x8xf32>
    %24 = vector.extract_strided_slice %17 {offsets = [0, 0], sizes = [1, 8], strides = [1, 1]} : vector<8x8xf32> to vector<1x8xf32>
    %25 = arith.addf %23, %24 : vector<1x8xf32>
    %c0_15 = arith.constant 0 : index
    %c0_16 = arith.constant 0 : index
    %26 = vector.load %arg6[%c0_15, %c0_16] : memref<8x8xf32, #tpu.memory_space<vmem>>, vector<1x8xf32>
    tpu.vector_store %arg6[%c0_15, %c0_16], %25 {strides = array<i32>} : memref<8x8xf32, #tpu.memory_space<vmem>>, vector<1x8xf32>,
    %27 = vector.extract_strided_slice %14 {offsets = [9, 0], sizes = [9, 1], strides = [1, 1]} : vector<72x1xf32> to vector<9x1xf32>
    %28 = vector.broadcast %27 : vector<9x1xf32> to vector<9x8xf32>
    %29 = arith.mulf %28, %18 : vector<9x8xf32>
    %cst_17 = arith.constant dense<0.000000e+00> : vector<8xf32>
    %30 = vector.multi_reduction <add>, %29, %cst_17 [0] : vector<9x8xf32> to vector<8xf32>
    %31 = vector.shape_cast %30 : vector<8xf32> to vector<1x8xf32>
    %32 = vector.extract_strided_slice %17 {offsets = [1, 0], sizes = [1, 8], strides = [1, 1]} : vector<8x8xf32> to vector<1x8xf32>
    %33 = arith.addf %31, %32 : vector<1x8xf32>
    %c1 = arith.constant 1 : index
    %c0_18 = arith.constant 0 : index
    %34 = vector.load %arg6[%c1, %c0_18] : memref<8x8xf32, #tpu.memory_space<vmem>>, vector<1x8xf32>
    tpu.vector_store %arg6[%c1, %c0_18], %33 {strides = array<i32>} : memref<8x8xf32, #tpu.memory_space<vmem>>, vector<1x8xf32>,
    %35 = vector.extract_strided_slice %14 {offsets = [18, 0], sizes = [9, 1], strides = [1, 1]} : vector<72x1xf32> to vector<9x1xf32>
    %36 = vector.broadcast %35 : vector<9x1xf32> to vector<9x8xf32>
    %37 = arith.mulf %36, %18 : vector<9x8xf32>
    %cst_19 = arith.constant dense<0.000000e+00> : vector<8xf32>
    %38 = vector.multi_reduction <add>, %37, %cst_19 [0] : vector<9x8xf32> to vector<8xf32>
    %39 = vector.shape_cast %38 : vector<8xf32> to vector<1x8xf32>
    %40 = vector.extract_strided_slice %17 {offsets = [2, 0], sizes = [1, 8], strides = [1, 1]} : vector<8x8xf32> to vector<1x8xf32>
    %41 = arith.addf %39, %40 : vector<1x8xf32>
    %c2 = arith.constant 2 : index
    %c0_20 = arith.constant 0 : index
    %42 = vector.load %arg6[%c2, %c0_20] : memref<8x8xf32, #tpu.memory_space<vmem>>, vector<1x8xf32>
    tpu.vector_store %arg6[%c2, %c0_20], %41 {strides = array<i32>} : memref<8x8xf32, #tpu.memory_space<vmem>>, vector<1x8xf32>,
    %43 = vector.extract_strided_slice %14 {offsets = [27, 0], sizes = [9, 1], strides = [1, 1]} : vector<72x1xf32> to vector<9x1xf32>
    %44 = vector.broadcast %43 : vector<9x1xf32> to vector<9x8xf32>
    %45 = arith.mulf %44, %18 : vector<9x8xf32>
    %cst_21 = arith.constant dense<0.000000e+00> : vector<8xf32>
    %46 = vector.multi_reduction <add>, %45, %cst_21 [0] : vector<9x8xf32> to vector<8xf32>
    %47 = vector.shape_cast %46 : vector<8xf32> to vector<1x8xf32>
    %48 = vector.extract_strided_slice %17 {offsets = [3, 0], sizes = [1, 8], strides = [1, 1]} : vector<8x8xf32> to vector<1x8xf32>
    %49 = arith.addf %47, %48 : vector<1x8xf32>
    %c3 = arith.constant 3 : index
    %c0_22 = arith.constant 0 : index
    %50 = vector.load %arg6[%c3, %c0_22] : memref<8x8xf32, #tpu.memory_space<vmem>>, vector<1x8xf32>
    tpu.vector_store %arg6[%c3, %c0_22], %49 {strides = array<i32>} : memref<8x8xf32, #tpu.memory_space<vmem>>, vector<1x8xf32>,
    %51 = vector.extract_strided_slice %14 {offsets = [36, 0], sizes = [9, 1], strides = [1, 1]} : vector<72x1xf32> to vector<9x1xf32>
    %52 = vector.broadcast %51 : vector<9x1xf32> to vector<9x8xf32>
    %53 = arith.mulf %52, %18 : vector<9x8xf32>
    %cst_23 = arith.constant dense<0.000000e+00> : vector<8xf32>
    %54 = vector.multi_reduction <add>, %53, %cst_23 [0] : vector<9x8xf32> to vector<8xf32>
    %55 = vector.shape_cast %54 : vector<8xf32> to vector<1x8xf32>
    %56 = vector.extract_strided_slice %17 {offsets = [4, 0], sizes = [1, 8], strides = [1, 1]} : vector<8x8xf32> to vector<1x8xf32>
    %57 = arith.addf %55, %56 : vector<1x8xf32>
    %c4 = arith.constant 4 : index
    %c0_24 = arith.constant 0 : index
    %58 = vector.load %arg6[%c4, %c0_24] : memref<8x8xf32, #tpu.memory_space<vmem>>, vector<1x8xf32>
    tpu.vector_store %arg6[%c4, %c0_24], %57 {strides = array<i32>} : memref<8x8xf32, #tpu.memory_space<vmem>>, vector<1x8xf32>,
    %59 = vector.extract_strided_slice %14 {offsets = [45, 0], sizes = [9, 1], strides = [1, 1]} : vector<72x1xf32> to vector<9x1xf32>
    %60 = vector.broadcast %59 : vector<9x1xf32> to vector<9x8xf32>
    %61 = arith.mulf %60, %18 : vector<9x8xf32>
    %cst_25 = arith.constant dense<0.000000e+00> : vector<8xf32>
    %62 = vector.multi_reduction <add>, %61, %cst_25 [0] : vector<9x8xf32> to vector<8xf32>
    %63 = vector.shape_cast %62 : vector<8xf32> to vector<1x8xf32>
    %64 = vector.extract_strided_slice %17 {offsets = [5, 0], sizes = [1, 8], strides = [1, 1]} : vector<8x8xf32> to vector<1x8xf32>
    %65 = arith.addf %63, %64 : vector<1x8xf32>
    %c5 = arith.constant 5 : index
    %c0_26 = arith.constant 0 : index
    %66 = vector.load %arg6[%c5, %c0_26] : memref<8x8xf32, #tpu.memory_space<vmem>>, vector<1x8xf32>
    tpu.vector_store %arg6[%c5, %c0_26], %65 {strides = array<i32>} : memref<8x8xf32, #tpu.memory_space<vmem>>, vector<1x8xf32>,
    %67 = vector.extract_strided_slice %14 {offsets = [54, 0], sizes = [9, 1], strides = [1, 1]} : vector<72x1xf32> to vector<9x1xf32>
    %68 = vector.broadcast %67 : vector<9x1xf32> to vector<9x8xf32>
    %69 = arith.mulf %68, %18 : vector<9x8xf32>
    %cst_27 = arith.constant dense<0.000000e+00> : vector<8xf32>
    %70 = vector.multi_reduction <add>, %69, %cst_27 [0] : vector<9x8xf32> to vector<8xf32>
    %71 = vector.shape_cast %70 : vector<8xf32> to vector<1x8xf32>
    %72 = vector.extract_strided_slice %17 {offsets = [6, 0], sizes = [1, 8], strides = [1, 1]} : vector<8x8xf32> to vector<1x8xf32>
    %73 = arith.addf %71, %72 : vector<1x8xf32>
    %c6 = arith.constant 6 : index
    %c0_28 = arith.constant 0 : index
    %74 = vector.load %arg6[%c6, %c0_28] : memref<8x8xf32, #tpu.memory_space<vmem>>, vector<1x8xf32>
    tpu.vector_store %arg6[%c6, %c0_28], %73 {strides = array<i32>} : memref<8x8xf32, #tpu.memory_space<vmem>>, vector<1x8xf32>,
    %75 = vector.extract_strided_slice %14 {offsets = [63, 0], sizes = [9, 1], strides = [1, 1]} : vector<72x1xf32> to vector<9x1xf32>
    %76 = vector.broadcast %75 : vector<9x1xf32> to vector<9x8xf32>
    %77 = arith.mulf %76, %18 : vector<9x8xf32>
    %cst_29 = arith.constant dense<0.000000e+00> : vector<8xf32>
    %78 = vector.multi_reduction <add>, %77, %cst_29 [0] : vector<9x8xf32> to vector<8xf32>
    %79 = vector.shape_cast %78 : vector<8xf32> to vector<1x8xf32>
    %80 = vector.extract_strided_slice %17 {offsets = [7, 0], sizes = [1, 8], strides = [1, 1]} : vector<8x8xf32> to vector<1x8xf32>
    %81 = arith.addf %79, %80 : vector<1x8xf32>
    %c7 = arith.constant 7 : index
    %c0_30 = arith.constant 0 : index
    %82 = vector.load %arg6[%c7, %c0_30] : memref<8x8xf32, #tpu.memory_space<vmem>>, vector<1x8xf32>
    tpu.vector_store %arg6[%c7, %c0_30], %81 {strides = array<i32>} : memref<8x8xf32, #tpu.memory_space<vmem>>, vector<1x8xf32>,
    return
  }
  func.func @transform_0(%arg0: i32) -> (i32, i32) {
    %c0_i32 = arith.constant 0 : i32
    %c0_i32_0 = arith.constant 0 : i32
    return %arg0, %c0_i32 : i32, i32
  }
  func.func @transform_1(%arg0: i32) -> (i32, i32) {
    %c0_i32 = arith.constant 0 : i32
    %c0_i32_0 = arith.constant 0 : i32
    return %arg0, %c0_i32 : i32, i32
  }
  func.func @transform_2(%arg0: i32) -> (i32, i32) {
    %c0_i32 = arith.constant 0 : i32
    %c0_i32_0 = arith.constant 0 : i32
    %c0_i32_1 = arith.constant 0 : i32
    return %c0_i32, %c0_i32_0 : i32, i32
  }
  func.func @transform_3(%arg0: i32) -> (i32, i32) {
    %c0_i32 = arith.constant 0 : i32
    %c0_i32_0 = arith.constant 0 : i32
    %c0_i32_1 = arith.constant 0 : i32
    return %c0_i32, %c0_i32_0 : i32, i32
  }
  func.func @transform_4(%arg0: i32) -> (i32, i32) {
    %c0_i32 = arith.constant 0 : i32
    %c0_i32_0 = arith.constant 0 : i32
    %c0_i32_1 = arith.constant 0 : i32
    return %c0_i32, %c0_i32_0 : i32, i32
  }
  func.func @transform_5(%arg0: i32) -> (i32, i32) {
    %c0_i32 = arith.constant 0 : i32
    %c0_i32_0 = arith.constant 0 : i32
    return %arg0, %c0_i32 : i32, i32
  }
}

</mosaic_0001>

<bundles_post_ra>
// kernel: gae_returns.1
= control target key start
LH: loop header
LB: loop body
LE: loop exit
PB: predicated region body
PF: predicated region fallthrough
CT: control target
= control target key end

     0   :  { %s1779_s0 = inlined_call_operand.hbm [shape: bf16[144,32], index: 0, kind: input, shape index: {}]   ;;  %s1780_s1 = inlined_call_operand.hbm [shape: f32[16,8], index: 1, kind: input, shape index: {}]   ;;  %s1781_s2 = inlined_call_operand.hbm [shape: bf16[34,64], index: 2, kind: input, shape index: {}]   ;;  %s1782_s3 = inlined_call_operand.hbm [shape: f32[9,8], index: 3, kind: input, shape index: {}]   ;;  %s1783_s4 = inlined_call_operand.hbm [shape: f32[8,8], index: 4, kind: input, shape index: {}]   ;;  %s1784_s5 = inlined_call_operand.hbm [shape: f32[16,8], index: 5, kind: output, shape index: {}]  }
   0x1   :  { %1791 = sst [smem:[#allocation17_spill]] %s1779_s0 }
   0x2   :  { %1792 = sst [smem:[#allocation18_spill]] %s1781_s2 }
   0x3   :  { %1793 = sst [smem:[#allocation19_spill]] %s1782_s3 }
   0x4   :  { %10 = vsyncpa [#allocation3], 0 }
   0x5   :  { %12 = vsyncpa [#allocation3 + $0x1], 0 }
   0x6   :  { %13 = vsyncpa [#allocation6], 0 }
   0x7   :  { %15 = vsyncpa [#allocation6 + $0x1], 0 }
   0x8   :  { %16 = vsyncpa [#allocation9], 0 }
   0x9   :  { %17 = vsyncpa [#allocation4], 0 }
   0xa   :  { %19 = vsyncpa [#allocation4 + $0x1], 0  ;;  %s1371_s18 = smov 0   ;;  %s1373_s19 = smov 0  }
   0xb   :  { %s1375_s20 = smov 0   ;;  %s1377_s21 = smov 0  }
   0xc LB: > { %s1392_s22 = sadd.s32 4294967295, %s1327_s21   ;;  %s933_s23 = sadd.s32 4294967294, %s1327_s21   ;;  %s1327_s21 = sphi %s1377_s21, %s1820_s21   ;;  %s1323_s20 = sphi %s1375_s20, %s1819_s20   ;;  %s1319_s19 = sphi %s1373_s19, %s1818_s19   ;;  %s1315_s18 = sphi %s1371_s18, %s1817_s18  }
   0xd   : > { %p45_p0 = scmp.ne.s32.totalorder %s1319_s19, %s1315_s18  ;;  %p1785_p1 = scmp.eq.s32.totalorder %s1392_s22, 0 }
   0xe   : > { %p164_p3 = scmp.eq.s32.totalorder %s933_s23, 1  ;;  %p934_p5 = scmp.ge.s32.totalorder %s1327_s21, 1 }
   0xf   : > { %p1401_p4 = por %p1785_p1, %p45_p0  ;;  %p171_p7 = scmp.lt.s32.totalorder %s1327_s21, 3 }
  0x10   : > { %p1406_p6 = por %p164_p3, %p45_p0  ;;  %s1329_s27 = smov [#allocation7]  }
  0x11   : > { %s1794_s24 = scalar_select %p1401_p4, 1, 0 }
  0x12   : > { %s1795_s25 = scalar_select %p1406_p6, 1, 0 }
  0x13   : > { %p1411_p8 = pnand %p934_p5, %p171_p7  ;;  %s183_s28 = sshll.u32 %s1329_s27, 4  ;;  %s1415_s28 = int_to_ptr.vmem [resolvable:$true] %s183_s28 }
  0x14   : > { %s1330_s30 = smov [#allocation8]   ;;  %s1798_s2 = sld [smem:[#allocation18_spill]] }
  0x15   : > { %s1796_s26 = scalar_select %p1411_p8, 1, 0 }
  0x16   : > { %p1028_p9 = pneg %p1411_p8  ;;  %s196_s6 = sshll.u32 %s1330_s30, 4  ;;  %s1426_s6 = int_to_ptr.vmem [resolvable:$true] %s196_s6 }
  0x18   : > { %p1422_p11 = pnand %p1028_p9, %p1785_p1 }
  0x1a   : > { %s1105_s9 = scalar_lea.hbm %s1798_s2, 320  ;;  %p1436_p13 = pneg %p1422_p11 }
  0x1b   : > { %p1106_p12 = scmp.ne.s32.totalorder %s1798_s2, %s1105_s9  ;;  %p1112_p5 = scmp.lt.u32.totalorder %s1105_s9, %s1798_s2 }
  0x1d   : > { %p1108_p0 = pnand %p1436_p13, %p1106_p12 }
  0x1f   : > { %p1109_p3 = pneg %p1108_p0 }
  0x21   : > { %p1114_p7 = pnand %p1112_p5, %p1109_p3 }
  0x23   : > { %1117 = shalt.err (!%p1114_p7)
}
  0x24   : > { %s1118_s15 = scalar_lea.vmem %s1415_s28, 320  ;;  %p1126_p2 = scmp.lt.s32.totalorder %s1415_s28, %s1415_s28 }
  0x25   : > { %p1119_p9 = scmp.ne.s32.totalorder %s1415_s28, %s1118_s15  ;;  %p1127_p6 = scmp.lt.s32.totalorder %s1118_s15, %s1118_s15 }
  0x27   : > { %p1121_p10 = pnand %p1119_p9, %p1436_p13  ;;  %p1128_p12 = por %p1127_p6, %p1126_p2 }
  0x29   : > { %p1122_p1 = pneg %p1121_p10 }
  0x2b   : > { %p1129_p0 = pnand %p1128_p12, %p1122_p1 }
  0x2d   : > { %1132 = shalt.err (!%p1129_p0)
}
  0x2e   : > { %s1786_s16 = smov 64   ;;  %s1787_s17 = smov 4  }
  0x2f   : > { %1031 = dma.hbm_to_vmem [thread:$0]  (!%p1422_p11), %s1798_s2, 320, %s1415_s28, [#allocation6], %s1786_s16, %s1786_s16, %s1787_s17  }
  0x30   : > { %s1800_s3 = sld [smem:[#allocation19_spill]] }
  0x36   : > { %s1133_s8 = scalar_lea.hbm %s1800_s3, 256 }
  0x37   : > { %p1134_p1 = scmp.ne.s32.totalorder %s1800_s3, %s1133_s8  ;;  %p1140_p10 = scmp.lt.u32.totalorder %s1133_s8, %s1800_s3 }
  0x39   : > { %p1136_p2 = pnand %p1134_p1, %p1436_p13 }
  0x3b   : > { %p1137_p6 = pneg %p1136_p2 }
  0x3d   : > { %p1142_p3 = pnand %p1140_p10, %p1137_p6 }
  0x3f   : > { %1145 = shalt.err (!%p1142_p3)
}
  0x40   : > { %s1146_s28 = scalar_lea.vmem %s1426_s6, 256  ;;  %p1154_p12 = scmp.lt.s32.totalorder %s1426_s6, %s1426_s6 }
  0x41   : > { %p1147_p5 = scmp.ne.s32.totalorder %s1426_s6, %s1146_s28  ;;  %p1155_p0 = scmp.lt.s32.totalorder %s1146_s28, %s1146_s28 }
  0x43   : > { %p1149_p7 = pnand %p1147_p5, %p1436_p13  ;;  %p1156_p1 = por %p1155_p0, %p1154_p12 }
  0x45   : > { %p1150_p9 = pneg %p1149_p7 }
  0x47   : > { %p1157_p2 = pnand %p1156_p1, %p1150_p9 }
  0x49   : > { %1160 = shalt.err (!%p1157_p2)
}
  0x4a   : > { %s1333_s14 = smov 128   ;;  %s1334_s15 = smov 8  }
  0x4b   : > { %1034 = dma.hbm_to_vmem [thread:$0]  (!%p1422_p11), %s1800_s3, 256, %s1426_s6, [#allocation9], %s1333_s14, %s1333_s14, %s1334_s15  }
  0x4c   : > { %s1335_s30 = smov [#allocation10]   ;;  %s1484_s8 = sadd.s32 1, %s1327_s21  }
  0x4d   : > { %s210_s7 = sshll.u32 %s1335_s30, 4  ;;  %s1161_s11 = scalar_lea.hbm %s1783_s4, 128  ;;  %s211_s7 = int_to_ptr.vmem [resolvable:$true] %s210_s7 }
  0x4e   : > { %p1162_p6 = scmp.ne.s32.totalorder %s1783_s4, %s1161_s11  ;;  %p1168_p5 = scmp.lt.u32.totalorder %s1161_s11, %s1783_s4 }
  0x50   : > { %p1164_p10 = pnand %p1162_p6, %p1436_p13 }
  0x52   : > { %p1165_p3 = pneg %p1164_p10 }
  0x54   : > { %p1170_p7 = pnand %p1168_p5, %p1165_p3 }
  0x56   : > { %1173 = shalt.err (!%p1170_p7)
}
  0x57   : > { %s1174_s6 = scalar_lea.vmem %s211_s7, 128  ;;  %p1182_p1 = scmp.lt.s32.totalorder %s211_s7, %s211_s7 }
  0x58   : > { %p1175_p9 = scmp.ne.s32.totalorder %s211_s7, %s1174_s6  ;;  %p1183_p2 = scmp.lt.s32.totalorder %s1174_s6, %s1174_s6 }
  0x5a   : > { %p1177_p12 = pnand %p1175_p9, %p1436_p13  ;;  %p1184_p4 = por %p1183_p2, %p1182_p1 }
  0x5c   : > { %p1178_p0 = pneg %p1177_p12 }
  0x5e   : > { %p1185_p8 = pnand %p1184_p4, %p1178_p0 }
  0x60   : > { %1188 = shalt.err (!%p1185_p8)
}
  0x61   : > { %1037 = dma.hbm_to_vmem [thread:$0]  (!%p1422_p11), %s1783_s4, 128, %s211_s7, [#allocation9]  }
  0x62   : > { %s29_s12 = ssub.s32 %s1327_s21, %s1484_s8  ;;  %s32_s16 = sadd.s32 1, %s1323_s20 }
  0x63   : > { %p30_p4 = scmp.eq.s32.totalorder %s29_s12, 0  ;;  %p39_p8 = scmp.ne.s32.totalorder %s1323_s20, %s1319_s19 }
  0x64   : > { %p40_p13 = scmp.eq.s32.totalorder %s1327_s21, 0  ;;  %p1052_p6 = scmp.lt.s32.totalorder %s1327_s21, 2 }
  0x65   : > { %s1512_s29 = scalar_select %p30_p4, %s1323_s20, %s32_s16  }
  0x66   : > { %p41_p10 = por %p40_p13, %p39_p8  ;;  %p1801_p3 = scmp.eq.s32.totalorder %s1392_s22, 1 }
  0x67   : > { %s1521_s23 = sand.u32 1, %s1323_s20   ;;  %s965_s27 = smul.u32 576, %s1327_s21 }
  0x68   : > { %p1516_p5 = por %p1801_p3, %p39_p8  ;;  %s1008_s30 = smul.u32 36, %s1521_s23 }
  0x69   : > { %s1803_s0 = sld [smem:[#allocation17_spill]]  ;;  %p1530_p11 = pnand %p1052_p6, %p41_p10 }
  0x6a   : > { %s1802_s17 = scalar_select %p1516_p5, 1, 0 }
  0x6b   : > { %s225_s28 = scalar_lea.vmem [#allocation2], %s1008_s30  ;;  %s222_s14 = scalar_lea.sflag [#allocation3], %s1521_s23 }
  0x6c   : > { %s232_s6 = sshll.u32 %s225_s28, 4  ;;  %p1191_p9 = pneg %p1530_p11  ;;  %s1535_s6 = int_to_ptr.vmem [resolvable:$true] %s232_s6 }
  0x6f   : > { %s1528_s10 = scalar_lea.hbm %s1803_s0, %s965_s27  ;;  %s1194_s27 = scalar_lea.hbm %s1803_s0, 1152 }
  0x70   : > { %s1189_s15 = scalar_lea.hbm %s1528_s10, 576  ;;  %p1195_p1 = scmp.lt.u32.totalorder %s1528_s10, %s1803_s0 }
  0x71   : > { %p1190_p7 = scmp.ne.s32.totalorder %s1528_s10, %s1189_s15  ;;  %p1196_p2 = scmp.lt.u32.totalorder %s1194_s27, %s1189_s15 }
  0x72   : > { %p1198_p8 = scmp.lt.u32.totalorder %s1189_s15, %s1528_s10 }
  0x73   : > { %p1192_p12 = pnand %p1191_p9, %p1190_p7  ;;  %p1197_p4 = por %p1196_p2, %p1195_p1 }
  0x75   : > { %p1193_p0 = pneg %p1192_p12  ;;  %p1199_p13 = por %p1198_p8, %p1197_p4 }
  0x77   : > { %p1200_p6 = pnand %p1199_p13, %p1193_p0 }
  0x79   : > { %1203 = shalt.err (!%p1200_p6)
}
  0x7a   : > { %s1204_s30 = scalar_lea.vmem %s1535_s6, 576  ;;  %s1336_s28 = smov [#allocation2]  }
  0x7b   : > { %p1205_p10 = scmp.ne.s32.totalorder %s1535_s6, %s1204_s30  ;;  %s1209_s12 = sshll.u32 %s1336_s28, 4  ;;  %s1210_s12 = int_to_ptr.vmem [resolvable:$false] %s1209_s12 }
  0x7c   : > { %s1211_s16 = scalar_lea.vmem %s1210_s12, 1152  ;;  %p1212_p12 = scmp.lt.s32.totalorder %s1535_s6, %s1210_s12 }
  0x7d   : > { %p1207_p3 = pnand %p1205_p10, %p1191_p9  ;;  %p1213_p1 = scmp.lt.s32.totalorder %s1211_s16, %s1204_s30 }
  0x7f   : > { %p1208_p7 = pneg %p1207_p3  ;;  %p1214_p2 = por %p1213_p1, %p1212_p12 }
  0x81   : > { %p1215_p4 = pnand %p1214_p2, %p1208_p7 }
  0x83   : > { %1218 = shalt.err (!%p1215_p4)
}
  0x84   : > { %s1805_s15 = smov 4   ;;  %s1806_s27 = smov 64  }
  0x85   : > { %1041 = dma.hbm_to_vmem [thread:$0]  (!%p1530_p11), %s1528_s10, 576, %s1535_s6, %s222_s14, %s1806_s27, %s1806_s27, %s1805_s15  }
  0x86   : > { %s940_s7 = sshll.u32 %s1521_s23, 3  ;;  %s941_s9 = sshll.u32 %s1327_s21, 7 }
  0x87   : > { %s1573_s12 = scalar_lea.hbm %s1780_s1, %s941_s9  ;;  %s246_s16 = scalar_lea.vmem [#allocation5], %s940_s7 }
  0x88   : > { %s253_s13 = sshll.u32 %s246_s16, 4  ;;  %s1807_s0 = sand.u32 1, %s1327_s21   ;;  %s254_s13 = int_to_ptr.vmem [resolvable:$true] %s253_s13 }
  0x89   : > { %s243_s2 = scalar_lea.sflag [#allocation6], %s1807_s0  ;;  %s1219_s3 = scalar_lea.hbm %s1573_s12, 128 }
  0x8a   : > { %p1220_p0 = scmp.ne.s32.totalorder %s1573_s12, %s1219_s3  ;;  %s1224_s6 = scalar_lea.hbm %s1780_s1, 256 }
  0x8b   : > { %p1225_p6 = scmp.lt.u32.totalorder %s1573_s12, %s1780_s1  ;;  %p1226_p10 = scmp.lt.u32.totalorder %s1224_s6, %s1219_s3 }
  0x8c   : > { %p1222_p8 = pnand %p1220_p0, %p1191_p9  ;;  %p1228_p7 = scmp.lt.u32.totalorder %s1219_s3, %s1573_s12 }
  0x8d   : > { %p1227_p3 = por %p1226_p10, %p1225_p6 }
  0x8e   : > { %p1223_p13 = pneg %p1222_p8 }
  0x8f   : > { %p1229_p12 = por %p1228_p7, %p1227_p3 }
  0x91   : > { %p1230_p1 = pnand %p1229_p12, %p1223_p13 }
  0x93   : > { %1233 = shalt.err (!%p1230_p1)
}
  0x94   : > { %s1234_s0 = scalar_lea.vmem %s254_s13, 128  ;;  %s1337_s27 = smov [#allocation5]  }
  0x95   : > { %p1235_p2 = scmp.ne.s32.totalorder %s254_s13, %s1234_s0  ;;  %s1239_s7 = sshll.u32 %s1337_s27, 4  ;;  %s1240_s7 = int_to_ptr.vmem [resolvable:$false] %s1239_s7 }
  0x96   : > { %s1241_s9 = scalar_lea.vmem %s1240_s7, 256  ;;  %p1242_p8 = scmp.lt.s32.totalorder %s254_s13, %s1240_s7 }
  0x97   : > { %p1237_p4 = pnand %p1235_p2, %p1191_p9  ;;  %p1243_p5 = scmp.lt.s32.totalorder %s1241_s9, %s1234_s0 }
  0x99   : > { %p1238_p0 = pneg %p1237_p4  ;;  %p1244_p6 = por %p1243_p5, %p1242_p8 }
  0x9b   : > { %p1245_p10 = pnand %p1244_p6, %p1238_p0 }
  0x9d   : > { %1248 = shalt.err (!%p1245_p10)
}
  0x9e   : > { %1044 = dma.hbm_to_vmem [thread:$0]  (!%p1530_p11), %s1573_s12, 128, %s254_s13, %s243_s2  }
  0x9f   : > { %p1808_p13 = scmp.ne.s32.totalorder %s1796_s26, 0 }
  0xa0   : > { %s1599_s3 = sand.u32 (!%p1808_p13), 1, %s1319_s19   ;;  %p1809_p5 = scmp.ne.s32.totalorder (!%p1808_p13), %s1794_s24, 0 }
  0xa1   : > { %262 = sbr.rel (%p1808_p13) target bundleno = 612 (0x264), region = 40  ;;  %s265_s28 = scalar_lea.sflag (!%p1808_p13), [#allocation3], %s1599_s3 }
  0xa2   : > { %s1009_s30 = smul.u32 (!%p1808_p13), 36, %s1599_s3 }
  0xa4   : > { %s1603_s16 = scalar_lea.vmem (!%p1808_p13), [#allocation2], %s1009_s30 }
  0xa8   : > { %1294 = dma.done.wait (%p1809_p5), %s265_s28, 576  }
  0xa9   : > { %1296 = vsyncadd (%p1809_p5), %s265_s28, 4294966720  ;;  %s273_s2 = sand.u32 1, %s1392_s22   ;;  %s943_s26 = sshll.u32 %s1599_s3, 3 }
  0xaa   : > { %s274_s11 = scalar_lea.sflag [#allocation6], %s273_s2  ;;  %s1613_s13 = scalar_lea.vmem [#allocation5], %s943_s26 }
  0xab   : > { %1298 = dma.done.wait (%p1809_p5), %s274_s11, 128  }
  0xac   : > { %1300 = vsyncadd (%p1809_p5), %s274_s11, 4294967168  ;;  %p1810_p11 = scmp.eq.s32.totalorder %s1392_s22, 0 }
  0xae   : > { %1302 = dma.done.wait (%p1810_p11), [#allocation6], 320   ;;  %p1811_p9 = pmov %p1810_p11 }
  0xb0   : > { %1304 = vsyncadd (%p1811_p9), [#allocation6], 4294966976  ;;  %p1812_p3 = pmov %p1811_p9 }
  0xb2   : > { %1306 = dma.done.wait (%p1812_p3), [#allocation9], 384   ;;  %p1813_p7 = pmov %p1812_p3 }
  0xb3   : > { %v1338_v0 = vmov 0.0   ;;  %vm1339_vm0 = vmmov 0   ;;  %v1098_v1 = vld [vmem:[#allocation7] sm:$0xff]   ;;  %v1099_v2 = vld [vmem:[#allocation7 + $0x8] sm:$0xff]   ;;  %vm377_vm1 = vcmask 261120   ;;  %v1102_v6 = vld [vmem:[%s1603_s16 + $0x8] sm:$0xff]   ;;  %v338_v10 = vlaneseq }
  0xb4   : > { %1308 = vsyncadd (%p1813_p7), [#allocation9], 4294966912  ;;  %975 = vmatprep.subr.bf16.mxu0 %v1338_v0  ;;  %1004 = vmatprep.subr.bf16.mxu1 %v1338_v0  ;;  %v1100_v3 = vld [vmem:[%s1603_s16] sm:$0xff]   ;;  %v1101_v4 = vld [vmem:[%s1603_s16 + $0x18] sm:$0xff]   ;;  %vm517_vm2 = vcmask 64512   ;;  %vm487_vm3 = vcmask 523264  }
  0xb5   : > { %979 = vmatprep.mubr.msk.bf16.mxu0 %vm1339_vm0, %v1338_v0  ;;  %991 = vmatprep.mubr.msk.bf16.mxu1 %vm1339_vm0, %v1338_v0  ;;  %v516_v5 = vld [vmem:[#allocation10] sm:$0xff]  ;;  %v1103_v8 = vld [vmem:[%s1603_s16 + $0x10] sm:$0xff]   ;;  %v339_v11 = vshrl.u32 %v338_v10, 7  ;;  %v327_v12 = vld [vmem:[#allocation7 + $0x10] sm:$0x1]  ;;  %vm647_vm4 = vcmask 1045504  }
  0xb6   : > { %976 = vmatpush3.bf16.msra.mxu0 %v1098_v1  ;;  %1006 = vmatpush3.bf16.msra.mxu1 %v1098_v1  ;;  %v1104_v7 = vld [vmem:[%s1603_s16 + $0x20] ss:$0 sps:$4 sm:$0xff]   ;;  %v515_v9 = vld [vmem:[%s1613_s13] sm:$0xff]  ;;  %v328_v13 = vunpack.c.l.bf16 %v327_v12  ;;  %vm675_vm5 = vcmask 1044480   ;;  %vm609_vm6 = vcmask 1040384   ;;  %vm637_vm7 = vcmask 1041408  }
  0xb7   : > { %977 = vmatprep.subr.bf16.mxu0 %v1338_v0  ;;  %1005 = vmatprep.subr.bf16.mxu1 %v1338_v0  ;;  %v340_v14 = vsub.s32 0, %v339_v11  ;;  %v476_v16 = vsub.s32 1, %v339_v11  ;;  %v592_v12 = vld [vmem:[#allocation8 + $0x8] sm:$0x1]  ;;  %vm596_vm8 = vcmask 57344   ;;  %vm665_vm9 = vcmask 1042432  }
  0xb8   : > { %vm693_vm10 = vcmask 1043456   ;;  %vm619_vm11 = vcmask 1046528   ;;  %vm770_vm12 = vcmask 63494   ;;  %vm635_vm13 = vcmask 58369   ;;  %s1706_s24 = scalar_lea.vmem [#allocation11], %s943_s26  ;;  %s962_s12 = sshll.u32 %s1392_s22, 7 }
  0xb9   : > { %v341_v15 = vrot.slane %v328_v13, %v340_v14  ;;  %v477_v29 = vrot.slane %v328_v13, %v476_v16  ;;  %v1656_v13 = vld [vmem:[#allocation8] sm:$0xff]  ;;  %v747_v16 = vrot.slane %v592_v12, 2  ;;  %vm663_vm14 = vcmask 59394   ;;  %s812_s23 = sshll.u32 %s1706_s24, 4  ;;  %s1732_s14 = scalar_lea.hbm %s1784_s5, %s962_s12  ;;  %s1734_s23 = int_to_ptr.vmem [resolvable:$true] %s812_s23 }
  0xba   : > { %978 = vmatpush3.bf16.msra.mxu0 %v1099_v2  ;;  %1007 = vmatpush3.bf16.msra.mxu1 %v1099_v2  ;;  %v746_v14 = vrot.slane %v1656_v13, 2  ;;  %vm691_vm15 = vcmask 60419   ;;  %s799_s22 = scalar_lea.sflag [#allocation4], %s1599_s3  ;;  %s1249_s15 = scalar_lea.vmem %s1734_s23, 128 }
  0xbb   : > { %999 = vmatprep.subr.mxu1 %v1338_v0  ;;  %p1250_p12 = scmp.ne.s32.totalorder %s1734_s23, %s1249_s15  ;;  %p1814_p1 = scmp.ne.s32.totalorder %s1802_s17, 0 }
  0xbc   : > { %s1340_s0 = smov [#allocation11]  }
  0xbd   : > { %980 = vmatmul.mubr.msk.bf16.vlgmr.msra.gmra.mrb[0].mxu0 %vm377_vm1, %v1100_v3  ;;  %992 = vmatmul.mubr.msk.bf16.vlgmr.msra.gmra.mrb[0].mxu1 %vm377_vm1, %v1101_v4  ;;  %p1251_p2 = pnand %p1250_p12, %p1814_p1  ;;  %s1253_s27 = sshll.u32 %s1340_s0, 4  ;;  %s1254_s27 = int_to_ptr.vmem [resolvable:$false] %s1253_s27 }
  0xbe   : > { %983 = vmatprep.mubr.msk.bf16.mxu0 %vm1339_vm0, %v1338_v0  ;;  %995 = vmatprep.mubr.msk.bf16.mxu1 %vm1339_vm0, %v1338_v0  ;;  %s1255_s7 = scalar_lea.vmem %s1254_s27, 256  ;;  %p1256_p0 = scmp.lt.s32.totalorder %s1734_s23, %s1254_s27 }
  0xbf   : > { %1000 = vmatpush3.msra.mxu1 %v516_v5  ;;  %p1252_p4 = pneg %p1251_p2  ;;  %p1257_p8 = scmp.lt.s32.totalorder %s1255_s7, %s1249_s15 }
  0xc1   : > { %p1258_p6 = por %p1257_p8, %p1256_p0 }
  0xc3   : > { %p1259_p10 = pnand %p1258_p6, %p1252_p4 }
  0xc5   : > { %984 = vmatmul.mubr.msk.bf16.gmra.mrb[4].mxu0 %vm377_vm1, %v1102_v6  ;;  %996 = vmatmul.mubr.msk.bf16.gmra.mrb[4].mxu1 %vm377_vm1, %v1104_v7 }
  0xc6   : > { %987 = vmatprep.mubr.msk.bf16.mxu0 %vm1339_vm0, %v1338_v0  ;;  %1001 = vmatprep.mubr.msk.f32.mxu1 %vm1339_vm0, %v1338_v0  ;;  %vm718_vm0 = vcmask 61444  }
  0xcd   : > { %988 = vmatmul.mubr.msk.bf16.gmra.mrb[8].mxu0 %vm377_vm1, %v1103_v8  ;;  %1002 = vmatmul.mubr.msk.f32.vlgmr.msra.gmra.mrb[8].mxu1 %vm517_vm2, %v515_v9  ;;  %vm744_vm1 = vcmask 62469  }
 0x190   : > { %v427_v17 = vpop.f32.mrb[0].mxu0  ;;  %v451_v18 = vpop.f32.mrb[0].mxu1 }
 0x191   : > { %v981_v19 = vpop.f32.mrb[1].mxu0  ;;  %v452_v20 = vadd.f32 %v451_v18, %v341_v15  ;;  %v993_v21 = vpop.f32.mrb[1].mxu1  ;;  %v428_v53 = vadd.f32 %v427_v17, %v341_v15  ;;  %v720_v18 = vrot.slane %v1656_v13, 3 }
 0x192   : > { %v430_v22 = vpop.f32.mrb[2].mxu0  ;;  %v454_v23 = vpop.f32.mrb[2].mxu1  ;;  %v721_v19 = vrot.slane %v592_v12, 3  ;;  %v611_v21 = vrot.slane %v592_v12, 7 }
 0x193   : > { %v431_v24 = vadd.f32 %v430_v22, %v341_v15  ;;  %v982_v25 = vpop.f32.mrb[3].mxu0  ;;  %v471_v26 = vmax.f32 %v452_v20, 0.0  ;;  %v455_v27 = vadd.f32 %v454_v23, %v341_v15  ;;  %v994_v28 = vpop.f32.mrb[3].mxu1  ;;  %v465_v0 = vmax.f32 %v428_v53, 0.0 }
 0x194   : > { %v748_v22 = vsel %vm647_vm4, %v746_v14, %v747_v16  ;;  %v638_v23 = vrot.slane %v1656_v13, 6  ;;  %v610_v25 = vrot.slane %v1656_v13, 7  ;;  %v722_v28 = vsel %vm675_vm5, %v720_v18, %v721_v19 }
 0x195   : > { %v466_v30 = vmax.f32 %v431_v24, 0.0  ;;  %v472_v31 = vmax.f32 %v455_v27, 0.0  ;;  %v484_v32 = vmul.f32 %v477_v29, %v471_v26  ;;  %v478_v8 = vmul.f32 %v477_v29, %v465_v0 }
 0x196   : > { %v639_v24 = vrot.slane %v592_v12, 6  ;;  %v772_v26 = vrot.slane %v1656_v13, 1 }
 0x197   : > { %v479_v33 = vmul.f32 %v477_v29, %v466_v30  ;;  %v506_v34 = vsel %vm487_vm3, %v484_v32, 0.0  ;;  %v485_v35 = vmul.f32 %v477_v29, %v472_v31  ;;  %v488_v9 = vsel %vm487_vm3, %v478_v8, 0.0 }
 0x198   : > { %v435_v36 = vpop.f32.mrb[4].mxu0  ;;  %507 = vadd.xlane.f32.xlu1 %v506_v34  ;;  %v459_v37 = vpop.f32.mrb[4].mxu1  ;;  %v612_v31 = vsel %vm609_vm6, %v610_v25, %v611_v21  ;;  %v640_v32 = vsel %vm637_vm7, %v638_v23, %v639_v24  ;;  %v694_v34 = vrot.slane %v1656_v13, 4 }
 0x199   : > { %v436_v38 = vadd.f32 %v435_v36, %v341_v15  ;;  %v985_v39 = vpop.f32.mrb[5].mxu0  ;;  %v491_v40 = vsel %vm487_vm3, %v479_v33, 0.0  ;;  %v997_v41 = vpop.f32.mrb[5].mxu1  ;;  %v509_v47 = vsel %vm487_vm3, %v485_v35, 0.0  ;;  %v460_v50 = vadd.f32 %v459_v37, %v341_v15 }
 0x19a   : > { %492 = vadd.xlane.f32.xlu0 %v491_v40  ;;  %v438_v42 = vpop.f32.mrb[6].mxu0  ;;  %v462_v43 = vpop.f32.mrb[6].mxu1  ;;  %v667_v33 = vrot.slane %v592_v12, 5  ;;  %v695_v35 = vrot.slane %v592_v12, 4  ;;  %v666_v40 = vrot.slane %v1656_v13, 5 }
 0x19b   : > { %v467_v44 = vmax.f32 %v436_v38, 0.0  ;;  %v439_v45 = vadd.f32 %v438_v42, %v341_v15  ;;  %v986_v46 = vpop.f32.mrb[7].mxu0  ;;  %v998_v48 = vpop.f32.mrb[7].mxu1  ;;  %v473_v57 = vmax.f32 %v460_v50, 0.0  ;;  %v773_v42 = vrot.slane %v592_v12, 1 }
 0x19c   : > { %v696_v50 = vsel %vm693_vm10, %v694_v34, %v695_v35 }
 0x19d   : > { %v468_v49 = vmax.f32 %v439_v45, 0.0  ;;  %v480_v51 = vmul.f32 %v477_v29, %v467_v44  ;;  %v486_v3 = vmul.f32 %v477_v29, %v473_v57 }
 0x19e   : > { %510 = vadd.xlane.f32.xlu0 %v509_v47 }
 0x19f   : > { %v481_v52 = vmul.f32 %v477_v29, %v468_v49  ;;  %v494_v58 = vsel %vm487_vm3, %v480_v51, 0.0  ;;  %v512_v7 = vsel %vm487_vm3, %v486_v3, 0.0  ;;  %v668_v49 = vsel %vm665_vm9, %v666_v40, %v667_v33 }
 0x1a0   : > { %v443_v54 = vpop.f32.mrb[8].mxu0  ;;  %v1654_v10 = vpop.f32.mrb[8].mxu1 }
 0x1a1   : > { %v444_v55 = vadd.f32 %v443_v54, %v341_v15  ;;  %v989_v56 = vpop.f32.mrb[9].mxu0  ;;  %v497_v59 = vsel %vm487_vm3, %v481_v52, 0.0  ;;  %v1003_v11 = vpop.f32.mrb[9].mxu1 }
 0x1a2   : > { %495 = vadd.xlane.f32.xlu0 %v494_v58  ;;  %498 = vadd.xlane.f32.xlu1 %v497_v59  ;;  %v446_v60 = vpop.f32.mrb[10].mxu0  ;;  %v774_v58 = vsel %vm619_vm11, %v772_v26, %v773_v42 }
 0x1a3   : > { %v469_v61 = vmax.f32 %v444_v55, 0.0  ;;  %v447_v62 = vadd.f32 %v446_v60, %v341_v15  ;;  %v990_v63 = vpop.f32.mrb[11].mxu0 }
 0x1a5   : > { %v470_v1 = vmax.f32 %v447_v62, 0.0  ;;  %v482_v2 = vmul.f32 %v477_v29, %v469_v61 }
 0x1a7   : > { %v500_v4 = vsel %vm487_vm3, %v482_v2, 0.0  ;;  %v483_v5 = vmul.f32 %v477_v29, %v470_v1 }
 0x1a8   : > { %501 = vadd.xlane.f32.xlu1 %v500_v4 }
 0x1a9   : > { %v503_v6 = vsel %vm487_vm3, %v483_v5, 0.0 }
 0x1aa   : > { %504 = vadd.xlane.f32.xlu0 %v503_v6 }
 0x1ac   : > { %513 = vadd.xlane.f32.xlu1 %v512_v7 }
 0x1ae   : > { %489 = vadd.xlane.f32.xlu0 %v488_v9 }
 0x225   : > { %v508_v15 = vpop.xlane.xlu1 %507 }
 0x226   : > { %v751_v20 = vmul.f32 %v746_v14, %v508_v15  ;;  %v1670_v38 = vmul.f32 %v722_v28, %v508_v15 }
 0x227   : > { %v493_v17 = vpop.xlane.xlu0 %492 }
 0x228   : > { %v755_v29 = vrot.slane %v751_v20, 6  ;;  %v615_v36 = vmul.f32 %v610_v25, %v493_v17  ;;  %v730_v55 = vrot.slane %v1670_v38, 5  ;;  %v594_v63 = vmul.f32 %v592_v12, %v493_v17 }
 0x22a   : > { %v620_v51 = vrot.slane %v615_v36, 1  ;;  %v735_v8 = vsel %vm596_vm8, %v730_v55, 0.0 }
 0x22b   : > { %v511_v27 = vpop.xlane.xlu0 %510 }
 0x22c   : > { %v752_v30 = vmul.f32 %v748_v22, %v511_v27  ;;  %v1679_v56 = vmul.f32 %v772_v26, %v511_v27 }
 0x22e   : > { %v756_v37 = vrot.slane %v752_v30, 6  ;;  %v781_v9 = vrot.slane %v1679_v56, 7 }
 0x22f   : > { %v496_v39 = vpop.xlane.xlu0 %495  ;;  %v499_v41 = vpop.xlane.xlu1 %498 }
 0x230   : > { %v761_v43 = vsel %vm596_vm8, %v756_v37, 0.0  ;;  %v616_v44 = vmul.f32 %v612_v31, %v496_v39  ;;  %v643_v45 = vmul.f32 %v638_v23, %v496_v39  ;;  %v757_v46 = vsel %vm637_vm7, %v755_v29, %v756_v37 }
 0x231   : > { %v760_v47 = vsel %vm517_vm2, %v757_v46, 0.0  ;;  %v644_v48 = vmul.f32 %v640_v32, %v499_v41  ;;  %v671_v61 = vmul.f32 %v666_v40, %v499_v41 }
 0x232   : > { %v621_v52 = vrot.slane %v616_v44, 1  ;;  %v648_v53 = vrot.slane %v643_v45, 2  ;;  %v762_v54 = vadd.f32 %v761_v43, %v760_v47 }
 0x233   : > { %v649_v57 = vrot.slane %v644_v48, 2  ;;  %v676_v16 = vrot.slane %v671_v61, 3 }
 0x234   : > { %v626_v59 = vsel %vm596_vm8, %v621_v52, 0.0  ;;  %v763_v60 = vrot.slane %v762_v54, 4  ;;  %v622_v62 = vsel %vm619_vm11, %v620_v51, %v621_v52 }
 0x235   : > { %v650_v0 = vsel %vm647_vm4, %v648_v53, %v649_v57  ;;  %v654_v1 = vsel %vm596_vm8, %v649_v57, 0.0  ;;  %v502_v2 = vpop.xlane.xlu1 %501  ;;  %v625_v3 = vsel %vm517_vm2, %v622_v62, 0.0  ;;  %v597_v57 = vsel %vm596_vm8, %v594_v63, 0.0 }
 0x236   : > { %v764_v4 = vadd.f32 %v763_v60, %v762_v54  ;;  %v653_v5 = vsel %vm517_vm2, %v650_v0, 0.0  ;;  %v672_v6 = vmul.f32 %v668_v49, %v502_v2  ;;  %v699_v7 = vmul.f32 %v694_v34, %v502_v2 }
 0x237   : > { %v655_v11 = vadd.f32 %v654_v1, %v653_v5  ;;  %v505_v14 = vpop.xlane.xlu0 %504  ;;  %v627_v15 = vadd.f32 %v626_v59, %v625_v3 }
 0x238   : > { %v765_v12 = vrot.slane %v764_v4, 2  ;;  %v677_v17 = vrot.slane %v672_v6, 3  ;;  %v700_v19 = vmul.f32 %v696_v50, %v505_v14  ;;  %v703_v21 = vrot.slane %v699_v7, 4 }
 0x239   : > { %v656_v20 = vrot.slane %v655_v11, 4  ;;  %v725_v22 = vmul.f32 %v720_v18, %v505_v14  ;;  %v628_v23 = vrot.slane %v627_v15, 4  ;;  %v514_v36 = vpop.xlane.xlu1 %513 }
 0x23a   : > { %v766_v24 = vadd.f32 %v765_v12, %v764_v4  ;;  %v678_v25 = vsel %vm675_vm5, %v676_v16, %v677_v17  ;;  %v682_v26 = vsel %vm596_vm8, %v677_v17, 0.0  ;;  %v704_v27 = vrot.slane %v700_v19, 4 }
 0x23b   : > { %v657_v28 = vadd.f32 %v656_v20, %v655_v11  ;;  %v681_v29 = vsel %vm517_vm2, %v678_v25, 0.0  ;;  %v729_v30 = vrot.slane %v725_v22, 5  ;;  %v629_v31 = vadd.f32 %v628_v23, %v627_v15  ;;  %v490_v40 = vpop.xlane.xlu0 %489 }
 0x23c   : > { %v767_v32 = vrot.slane %v766_v24, 1  ;;  %v683_v33 = vadd.f32 %v682_v26, %v681_v29  ;;  %v705_v34 = vsel %vm693_vm10, %v703_v21, %v704_v27  ;;  %v709_v35 = vsel %vm596_vm8, %v704_v27, 0.0 }
 0x23d   : > { %v658_v18 = vrot.slane %v657_v28, 2  ;;  %v708_v37 = vsel %vm517_vm2, %v705_v34, 0.0  ;;  %v731_v38 = vsel %vm665_vm9, %v729_v30, %v730_v55  ;;  %v630_v39 = vrot.slane %v629_v31, 2 }
 0x23e   : > { %v768_v41 = vadd.f32 %v767_v32, %v766_v24  ;;  %v684_v42 = vrot.slane %v683_v33, 4  ;;  %v710_v43 = vadd.f32 %v709_v35, %v708_v37  ;;  %v734_v44 = vsel %vm517_vm2, %v731_v38, 0.0 }
 0x23f   : > { %v659_v45 = vadd.f32 %v658_v18, %v657_v28  ;;  %v736_v46 = vadd.f32 %v735_v8, %v734_v44  ;;  %v631_v47 = vadd.f32 %v630_v39, %v629_v31  ;;  %v778_v48 = vmul.f32 %v774_v58, %v514_v36 }
 0x240   : > { %v685_v49 = vadd.f32 %v684_v42, %v683_v33  ;;  %v711_v50 = vrot.slane %v710_v43, 4  ;;  %v593_v51 = vmul.f32 %v1656_v13, %v490_v40  ;;  %v769_v52 = vadd.f32 %v768_v41, %v1654_v10 }
 0x241   : > { %v660_v53 = vrot.slane %v659_v45, 1  ;;  %v737_v54 = vrot.slane %v736_v46, 4  ;;  %v632_v55 = vrot.slane %v631_v47, 1  ;;  %v782_v56 = vrot.slane %v778_v48, 7 }
 0x242   : > { %v686_v59 = vrot.slane %v685_v49, 2  ;;  %v712_v60 = vadd.f32 %v711_v50, %v710_v43  ;;  %v595_v61 = vsel %vm517_vm2, %v593_v51, 0.0  ;;  %771 = vst.msk [vmem:[%s1706_s24] sm:$0x40] %vm770_vm12, %v769_v52 }
 0x243   : > { %v661_v58 = vadd.f32 %v660_v53, %v659_v45  ;;  %v738_v13 = vadd.f32 %v737_v54, %v736_v46  ;;  %v633_v62 = vadd.f32 %v632_v55, %v631_v47  ;;  %v783_v0 = vsel %vm609_vm6, %v781_v9, %v782_v56 }
 0x244   : > { %v687_v1 = vadd.f32 %v686_v59, %v685_v49  ;;  %v713_v2 = vrot.slane %v712_v60, 2  ;;  %v786_v63 = vsel %vm517_vm2, %v783_v0, 0.0  ;;  %v787_v3 = vsel %vm596_vm8, %v782_v56, 0.0 }
 0x245   : > { %v739_v4 = vrot.slane %v738_v13, 2  ;;  %v788_v5 = vadd.f32 %v787_v3, %v786_v63  ;;  %v598_v6 = vadd.f32 %v597_v57, %v595_v61  ;;  %v634_v7 = vadd.f32 %v633_v62, %v1654_v10 }
 0x246   : > { %v688_v8 = vrot.slane %v687_v1, 1  ;;  %v714_v11 = vadd.f32 %v713_v2, %v712_v60  ;;  %v662_v14 = vadd.f32 %v661_v58, %v1654_v10  ;;  %vm796_vm2 = vcmask 64519  }
 0x247   : > { %v740_v15 = vadd.f32 %v739_v4, %v738_v13  ;;  %v789_v12 = vrot.slane %v788_v5, 4  ;;  %v599_v9 = vrot.slane %v598_v6, 4  ;;  %636 = vst.msk [vmem:[%s1706_s24] sm:$0x2] %vm635_vm13, %v634_v7 }
 0x248   : > { %v689_v16 = vadd.f32 %v688_v8, %v687_v1  ;;  %v715_v17 = vrot.slane %v714_v11, 1  ;;  %664 = vst.msk [vmem:[%s1706_s24] sm:$0x4] %vm663_vm14, %v662_v14 }
 0x249   : > { %v741_v19 = vrot.slane %v740_v15, 1  ;;  %v790_v20 = vadd.f32 %v789_v12, %v788_v5  ;;  %v600_v21 = vadd.f32 %v599_v9, %v598_v6 }
 0x24a   : > { %v716_v22 = vadd.f32 %v715_v17, %v714_v11  ;;  %v690_v23 = vadd.f32 %v689_v16, %v1654_v10 }
 0x24b   : > { %v742_v24 = vadd.f32 %v741_v19, %v740_v15  ;;  %v791_v25 = vrot.slane %v790_v20, 2  ;;  %v601_v26 = vrot.slane %v600_v21, 2 }
 0x24c   : > { %692 = vst.msk [vmem:[%s1706_s24] sm:$0x8] %vm691_vm15, %v690_v23  ;;  %v717_v27 = vadd.f32 %v716_v22, %v1654_v10 }
 0x24d   : > { %v792_v28 = vadd.f32 %v791_v25, %v790_v20  ;;  %v602_v29 = vadd.f32 %v601_v26, %v600_v21  ;;  %v743_v30 = vadd.f32 %v742_v24, %v1654_v10 }
 0x24e   : > { %719 = vst.msk [vmem:[%s1706_s24] sm:$0x10] %vm718_vm0, %v717_v27 }
 0x24f   : > { %v793_v31 = vrot.slane %v792_v28, 1  ;;  %v603_v32 = vrot.slane %v602_v29, 1  ;;  %745 = vst.msk [vmem:[%s1706_s24] sm:$0x20] %vm744_vm1, %v743_v30 }
 0x251   : > { %v794_v33 = vadd.f32 %v793_v31, %v792_v28  ;;  %v604_v34 = vadd.f32 %v603_v32, %v602_v29 }
 0x253   : > { %v605_v35 = vadd.f32 %v604_v34, %v1654_v10  ;;  %v795_v36 = vadd.f32 %v794_v33, %v1654_v10 }
 0x255   : > { %606 = vst.msk [vmem:[%s1706_s24] sm:$0x1] %vm596_vm8, %v605_v35 }
 0x256   : > { %797 = vst.msk [vmem:[%s1706_s24] sm:$0x80] %vm796_vm2, %v795_v36 }
 0x257   : > { %1262 = shalt.err (!%p1259_p10)
}
 0x258   : > { %s1263_s9 = scalar_lea.hbm %s1732_s14, 128  ;;  %s1267_s28 = scalar_lea.hbm %s1784_s5, 256 }
 0x259   : > { %p1264_p13 = scmp.ne.s32.totalorder %s1732_s14, %s1263_s9  ;;  %p1268_p9 = scmp.lt.u32.totalorder %s1732_s14, %s1784_s5 }
 0x25a   : > { %p1269_p3 = scmp.lt.u32.totalorder %s1267_s28, %s1263_s9  ;;  %p1271_p12 = scmp.lt.u32.totalorder %s1263_s9, %s1732_s14 }
 0x25b   : > { %p1265_p5 = pnand %p1264_p13, %p1814_p1 }
 0x25c   : > { %p1270_p7 = por %p1269_p3, %p1268_p9 }
 0x25d   : > { %p1266_p11 = pneg %p1265_p5 }
 0x25e   : > { %p1272_p2 = por %p1271_p12, %p1270_p7 }
 0x260   : > { %p1273_p4 = pnand %p1272_p2, %p1266_p11 }
 0x262   : > { %1276 = shalt.err (!%p1273_p4)
}
 0x263   : > { %1026 = dma.vmem_to_hbm [thread:$0]  (%p1814_p1), %s1734_s23, 128, %s1732_s14, %s799_s22  }
 0x264 PF: > { %s824_s26 = sand.u32 1, %s1315_s18   ;;  %p1815_p0 = scmp.ne.s32.totalorder %s1795_s25, 0 }
 0x265   : > { %p1816_p8 = scmp.ge.s32.totalorder %s1327_s21, 2  ;;  %s825_s11 = scalar_lea.sflag [#allocation4], %s824_s26 }
 0x267   : > { %p1046_p6 = pnand %p1816_p8, %p1815_p0 }
 0x269   : > { %1310 = dma.done.wait (!%p1046_p6), %s825_s11, 128  }
 0x26a   : > { %1312 = vsyncadd (!%p1046_p6), %s825_s11, 4294967168  ;;  %p22_p10 = scmp.ge.s32.totalorder %s1484_s8, 4   ;;  %s1817_s18 = smov %s1319_s19 }
 0x26b   : > { %s1818_s19 = smov %s1323_s20  ;;  %s1819_s20 = smov %s1512_s29 }
 0x26c   : > { %s1820_s21 = smov %s1484_s8  ;;  %24 = sbr.rel (!%p22_p10) target bundleno = 12 (0xc), region = 110 }
 0x273   :  { %830 = vsyncpa [#allocation3], 1 }
 0x274   :  { %832 = vsyncpa [#allocation3 + $0x1], 1 }
 0x275   :  { %833 = vsyncpa [#allocation6], 1 }
 0x276   :  { %835 = vsyncpa [#allocation6 + $0x1], 1 }
 0x277   :  { %836 = vsyncpa [#allocation9], 1 }
 0x278   :  { %837 = vsyncpa [#allocation4], 1 }
 0x279   :  { %839 = vsyncpa [#allocation4 + $0x1], 1 }

</bundles_post_ra>
